<compile_context>
chip_gen: v6e
topology: v6e:2x2x1
jax: 0.10.0
libtpu: 0.0.40
codegen_flags: <defaults>
</compile_context>

<pallas_src>
import jax
import jax.numpy as jnp
from jax.experimental import pallas as pl
from jax.experimental.pallas import tpu as pltpu


def _round_up(n, m):
    return ((n + m - 1) // m) * m


def _ceil_div(a, b):
    return -(-a // b)


# ----------------------------------------------------------------------------
# Kernel: one batch tile of the fused 3-layer MLP (MXU matmuls, f32 accumulate)
# ----------------------------------------------------------------------------
def _mlp_kernel(x_ref, w1_ref, b1_ref, w2_ref, b2_ref, w3_ref, b3_ref, o_ref):
    # x arrives in its storage dtype (f32); cast to the MXU compute dtype here
    # so the wrapper never runs a separate pad/cast pass over x.
    x = x_ref[...].astype(w1_ref.dtype)                                   # (TB, In)

    # layer1 + bias + ReLU (f32 epilogue on the f32 accumulator).
    h1 = jnp.dot(x, w1_ref[...], preferred_element_type=jnp.float32)      # (TB, H1p)
    h1 = jnp.maximum(h1 + b1_ref[...], 0.0)

    # dropout(p=0.2): identity at inference time.

    # layer2 + bias + ReLU.
    h1 = h1.astype(w2_ref.dtype)
    h2 = jnp.dot(h1, w2_ref[...], preferred_element_type=jnp.float32)     # (TB, H2p)
    h2 = jnp.maximum(h2 + b2_ref[...], 0.0)

    # layer3 (logits; forward() has no softmax).
    h2 = h2.astype(w3_ref.dtype)
    out = jnp.dot(h2, w3_ref[...], preferred_element_type=jnp.float32)    # (TB, C)
    o_ref[...] = (out + b3_ref[...]).astype(o_ref.dtype)


# ----------------------------------------------------------------------------
# Parameter preparation (done ONCE, outside the per-call path)
# ----------------------------------------------------------------------------
def prepare_params(w1, b1, w2, b2, w3, b3, compute_dtype=jnp.bfloat16):
    """Pad hidden dims to 128 lanes, cast weights to the MXU compute dtype,
    keep biases f32. Weights are (in, out), i.e. transposed vs. torch's
    nn.Linear.weight. input_size and num_classes stay UNPADDED."""
    in_sz, h1_sz = w1.shape
    h2_sz = w2.shape[1]
    c_sz = w3.shape[1]
    h1_p = _round_up(h1_sz, 128)
    h2_p = _round_up(h2_sz, 128)

    pad2 = lambda a, r, c: jnp.pad(a, ((0, r - a.shape[0]), (0, c - a.shape[1])))

    w1_p = pad2(w1, in_sz, h1_p).astype(compute_dtype)
    w2_p = pad2(w2, h1_p, h2_p).astype(compute_dtype)
    w3_p = pad2(w3, h2_p, c_sz).astype(compute_dtype)
    b1_p = pad2(b1.reshape(1, -1), 1, h1_p).astype(jnp.float32)
    b2_p = pad2(b2.reshape(1, -1), 1, h2_p).astype(jnp.float32)
    b3_p = b3.reshape(1, -1).astype(jnp.float32)
    return (w1_p, b1_p, w2_p, b2_p, w3_p, b3_p)


# ----------------------------------------------------------------------------
# Tile selection + pallas_call construction
# ----------------------------------------------------------------------------
def _pick_batch_tile(B, in_sz, h1_p, h2_p, c_sz, block_batch):
    b8 = _round_up(max(B, 1), 8)
    if block_batch is not None:
        tb = _round_up(block_batch, 8)
    else:
        tb = min(4096, b8)                      # big tiles amortize per-step overhead
        if tb == b8 and b8 >= 16:
            # keep >= 2 grid blocks so both v7x TensorCores get work
            tb = _round_up(_ceil_div(B, 2), 8)

    def per_step_bytes(t):
        io = 2 * t * (in_sz * 4 + c_sz * 4)     # double-buffered x / out tiles (f32)
        act = t * (h1_p + h2_p) * 4             # f32 intermediates in the body
        return io + act

    # keep the per-step footprint comfortably inside v7x's 64 MiB VMEM
    while tb > 256 and per_step_bytes(tb) > (28 << 20):
        tb = _round_up(tb // 2, 8)
    return max(tb, 8)


def _build_call(tb, in_sz, h1_p, h2_p, c_sz, n_blocks, compute_dtype):
    def tiled(shape):          # activation / output tiles marching over batch
        return pl.BlockSpec(shape, lambda i: (i, 0))

    def resident(shape):       # grid-invariant weight / bias blocks (constant map)
        return pl.BlockSpec(shape, lambda i: (0, 0))

    itemsize = jnp.dtype(compute_dtype).itemsize
    weight_bytes = (in_sz * h1_p + h1_p * h2_p + h2_p * c_sz) * itemsize
    bias_bytes = (h1_p + h2_p + c_sz) * 4
    io_bytes = 2 * tb * (in_sz * 4 + c_sz * 4)          # double-buffered x / out tiles
    act_bytes = tb * (h1_p + h2_p) * 4                  # f32 intermediates
    est = 2 * weight_bytes + 2 * bias_bytes + io_bytes + act_bytes
    # ~2x the real footprint, small floor, well under v7x's 64 MiB physical VMEM.
    vmem_limit = int(min(max(2 * est + (2 << 20), 8 << 20), 60 << 20))

    flops = 2 * n_blocks * tb * (in_sz * h1_p + h1_p * h2_p + h2_p * c_sz)
    bytes_accessed = (n_blocks * tb * (in_sz * 4 + c_sz * 4)
                      + weight_bytes + bias_bytes)

    return pl.pallas_call(
        _mlp_kernel,
        out_shape=jax.ShapeDtypeStruct((n_blocks * tb, c_sz), jnp.float32),
        grid=(n_blocks,),
        in_specs=[
            tiled((tb, in_sz)),                 # x: feature dim UNPADDED (full-dim rule)
            resident((in_sz, h1_p)), resident((1, h1_p)),
            resident((h1_p, h2_p)), resident((1, h2_p)),
            resident((h2_p, c_sz)), resident((1, c_sz)),
        ],
        out_specs=tiled((tb, c_sz)),            # class dim UNPADDED -> narrow writeback
        compiler_params=pltpu.CompilerParams(
            dimension_semantics=("parallel",),
            vmem_limit_bytes=vmem_limit,
        ),
        cost_estimate=pl.CostEstimate(
            flops=flops, transcendentals=0, bytes_accessed=bytes_accessed),
    )


# ----------------------------------------------------------------------------
# Public forward
# ----------------------------------------------------------------------------
def disease_classifier_forward(x, prepared_params, *, block_batch=None,
                               min_pallas_batch=64):
    """Fused 3-layer MLP forward.
    x: (B, input_size) f32; prepared_params: output of prepare_params().
    Returns (B, num_classes) f32 logits."""
    w1_p, b1_p, w2_p, b2_p, w3_p, b3_p = prepared_params
    B, in_sz = x.shape
    assert in_sz == w1_p.shape[0], "x feature dim must match layer1 fan-in"
    h1_p, h2_p, c_sz = w1_p.shape[1], w2_p.shape[1], w3_p.shape[1]

    # Small-problem fast path: a single fused XLA dot chain beats kernel launch
    # + DMA overhead for tiny batches on all TPU generations.
    if B < min_pallas_batch:
        f32 = jnp.float32
        h1 = jnp.maximum(x.astype(f32) @ w1_p.astype(f32) + b1_p, 0.0)
        h2 = jnp.maximum(h1 @ w2_p.astype(f32) + b2_p, 0.0)
        return h2 @ w3_p.astype(f32) + b3_p

    tb = _pick_batch_tile(B, in_sz, h1_p, h2_p, c_sz, block_batch)
    n_blocks = _ceil_div(B, tb)
    b_p = n_blocks * tb

    x_in = x.astype(jnp.float32)
    if b_p != B:
        x_in = jnp.pad(x_in, ((0, b_p - B), (0, 0)))   # batch pad only

    call = _build_call(tb, in_sz, h1_p, h2_p, c_sz, n_blocks, w1_p.dtype)
    out = call(x_in, w1_p, b1_p, w2_p, b2_p, w3_p, b3_p)
    return out[:B] if b_p != B else out


# ----------------------------------------------------------------------------
# PyTorch-Linear-like init (uniform fan-in). Weights are (in, out).
# ----------------------------------------------------------------------------
def init_params(key, input_size, hidden_size, num_classes):
    def linear(k, fan_in, fan_out):
        kw, kb = jax.random.split(k)
        bound = 1.0 / jnp.sqrt(fan_in)
        w = jax.random.uniform(kw, (fan_in, fan_out), jnp.float32, -bound, bound)
        b = jax.random.uniform(kb, (1, fan_out), jnp.float32, -bound, bound)
        return w, b

    k1, k2, k3 = jax.random.split(key, 3)
    w1, b1 = linear(k1, input_size, hidden_size)
    w2, b2 = linear(k2, hidden_size, hidden_size // 2)
    w3, b3 = linear(k3, hidden_size // 2, num_classes)
    return w1, b1, w2, b2, w3, b3


def _reference_forward(x, raw_params):
    w1, b1, w2, b2, w3, b3 = raw_params
    h1 = jnp.maximum(x @ w1 + b1, 0.0)
    h2 = jnp.maximum(h1 @ w2 + b2, 0.0)
    return h2 @ w3 + b3


if __name__ == "__main__":
    # Small, module-consistent shapes.
    batch = 2
    input_size = 16
    hidden_size = 32
    num_classes = 4

    key = jax.random.PRNGKey(0)
    kx, kp, kx2 = jax.random.split(key, 3)

    x = jax.random.normal(kx, (batch, input_size), dtype=jnp.float32)
    raw = init_params(kp, input_size, hidden_size, num_classes)

    ref = _reference_forward(x, raw)

    # f32 compute path through the Pallas kernel (forced: min_pallas_batch=0).
    params_f32 = prepare_params(*raw, compute_dtype=jnp.float32)
    logits_f32 = jax.block_until_ready(
        disease_classifier_forward(x, params_f32, min_pallas_batch=0))
    assert logits_f32.shape == (batch, num_classes)
    assert jnp.allclose(logits_f32, ref, atol=1e-3, rtol=1e-3), "f32 mismatch vs reference"

    # Default bf16-MXU / f32-accumulate path: small quantization error only.
    params_bf16 = prepare_params(*raw)   # hoisted: reuse across calls
    logits_bf16 = jax.block_until_ready(
        disease_classifier_forward(x, params_bf16, min_pallas_batch=0))
    assert logits_bf16.shape == (batch, num_classes)
    assert jnp.allclose(logits_bf16, ref, atol=5e-2, rtol=5e-2), "bf16 mismatch vs reference"

    # Larger batch: exercises the 2-block batch-tiled grid (tb=80, n_blocks=2).
    xb = jax.random.normal(kx2, (160, input_size), dtype=jnp.float32)
    refb = _reference_forward(xb, raw)
    logits_b = jax.block_until_ready(
        disease_classifier_forward(xb, params_bf16, min_pallas_batch=0))
    assert logits_b.shape == (160, num_classes)
    assert jnp.allclose(logits_b, refb, atol=5e-2, rtol=5e-2), "tiled bf16 mismatch vs reference"

    print("KERNEL_OK")
</pallas_src>

<mosaic_0001>
module attributes {stable_mosaic.version = 11 : i64} {
  func.func @_mlp_kernel(%arg0: i32, %arg1: memref<8x16xf32, #tpu.memory_space<vmem>>, %arg2: memref<16x128xf32, #tpu.memory_space<vmem>>, %arg3: memref<1x128xf32, #tpu.memory_space<vmem>>, %arg4: memref<128x128xf32, #tpu.memory_space<vmem>>, %arg5: memref<1x128xf32, #tpu.memory_space<vmem>>, %arg6: memref<128x4xf32, #tpu.memory_space<vmem>>, %arg7: memref<1x4xf32, #tpu.memory_space<vmem>>, %arg8: memref<8x4xf32, #tpu.memory_space<vmem>>) attributes {dimension_semantics = [#tpu.dimension_semantics<parallel>], iteration_bounds = array<i64: 1>, scalar_prefetch = 0 : i64, scratch_operands = 0 : i64, tpu.core_type = #tpu.core_type<tc>, window_params = [{transform_indices = @transform_0, window_bounds = array<i64: 8, 16>}, {pipeline_mode = #tpu.pipeline_mode<synchronous>, transform_indices = @transform_1, window_bounds = array<i64: 16, 128>}, {pipeline_mode = #tpu.pipeline_mode<synchronous>, transform_indices = @transform_2, window_bounds = array<i64: 1, 128>}, {pipeline_mode = #tpu.pipeline_mode<synchronous>, transform_indices = @transform_3, window_bounds = array<i64: 128, 128>}, {pipeline_mode = #tpu.pipeline_mode<synchronous>, transform_indices = @transform_4, window_bounds = array<i64: 1, 128>}, {pipeline_mode = #tpu.pipeline_mode<synchronous>, transform_indices = @transform_5, window_bounds = array<i64: 128, 4>}, {pipeline_mode = #tpu.pipeline_mode<synchronous>, transform_indices = @transform_6, window_bounds = array<i64: 1, 4>}, {transform_indices = @transform_7, window_bounds = array<i64: 8, 4>}]} {
    %c0 = arith.constant 0 : index
    %c0_0 = arith.constant 0 : index
    %0 = vector.load %arg1[%c0, %c0_0] : memref<8x16xf32, #tpu.memory_space<vmem>>, vector<8x16xf32>
    %c0_1 = arith.constant 0 : index
    %c0_2 = arith.constant 0 : index
    %1 = vector.load %arg2[%c0_1, %c0_2] : memref<16x128xf32, #tpu.memory_space<vmem>>, vector<16x128xf32>
    %cst = arith.constant dense<0.000000e+00> : vector<8x128xf32>
    %2 = tpu.matmul %0, %1, %cst {dimension_numbers = #tpu.dot_dimension_numbers<[1], [0], [0], [1], [0, 0, 1, 1], [], []>} : vector<8x16xf32>, vector<16x128xf32>, vector<8x128xf32> -> vector<8x128xf32>
    %c0_3 = arith.constant 0 : index
    %c0_4 = arith.constant 0 : index
    %3 = vector.load %arg3[%c0_3, %c0_4] : memref<1x128xf32, #tpu.memory_space<vmem>>, vector<1x128xf32>
    %4 = vector.broadcast %3 : vector<1x128xf32> to vector<8x128xf32>
    %5 = arith.addf %2, %4 : vector<8x128xf32>
    %cst_5 = arith.constant 0.000000e+00 : f32
    %6 = vector.broadcast %cst_5 : f32 to vector<8x128xf32>
    %7 = arith.maximumf %5, %6 : vector<8x128xf32>
    %c0_6 = arith.constant 0 : index
    %c0_7 = arith.constant 0 : index
    %8 = vector.load %arg4[%c0_6, %c0_7] : memref<128x128xf32, #tpu.memory_space<vmem>>, vector<128x128xf32>
    %cst_8 = arith.constant dense<0.000000e+00> : vector<8x128xf32>
    %9 = tpu.matmul %7, %8, %cst_8 {dimension_numbers = #tpu.dot_dimension_numbers<[1], [0], [0], [1], [0, 0, 1, 1], [], []>} : vector<8x128xf32>, vector<128x128xf32>, vector<8x128xf32> -> vector<8x128xf32>
    %c0_9 = arith.constant 0 : index
    %c0_10 = arith.constant 0 : index
    %10 = vector.load %arg5[%c0_9, %c0_10] : memref<1x128xf32, #tpu.memory_space<vmem>>, vector<1x128xf32>
    %11 = vector.broadcast %10 : vector<1x128xf32> to vector<8x128xf32>
    %12 = arith.addf %9, %11 : vector<8x128xf32>
    %cst_11 = arith.constant 0.000000e+00 : f32
    %13 = vector.broadcast %cst_11 : f32 to vector<8x128xf32>
    %14 = arith.maximumf %12, %13 : vector<8x128xf32>
    %c0_12 = arith.constant 0 : index
    %c0_13 = arith.constant 0 : index
    %15 = vector.load %arg6[%c0_12, %c0_13] : memref<128x4xf32, #tpu.memory_space<vmem>>, vector<128x4xf32>
    %cst_14 = arith.constant dense<0.000000e+00> : vector<8x4xf32>
    %16 = tpu.matmul %14, %15, %cst_14 {dimension_numbers = #tpu.dot_dimension_numbers<[1], [0], [0], [1], [0, 0, 1, 1], [], []>} : vector<8x128xf32>, vector<128x4xf32>, vector<8x4xf32> -> vector<8x4xf32>
    %c0_15 = arith.constant 0 : index
    %c0_16 = arith.constant 0 : index
    %17 = vector.load %arg7[%c0_15, %c0_16] : memref<1x4xf32, #tpu.memory_space<vmem>>, vector<1x4xf32>
    %18 = vector.broadcast %17 : vector<1x4xf32> to vector<8x4xf32>
    %19 = arith.addf %16, %18 : vector<8x4xf32>
    %c0_17 = arith.constant 0 : index
    %c0_18 = arith.constant 0 : index
    %20 = vector.load %arg8[%c0_17, %c0_18] : memref<8x4xf32, #tpu.memory_space<vmem>>, vector<8x4xf32>
    tpu.vector_store %arg8[%c0_17, %c0_18], %19 {strides = array<i32>} : memref<8x4xf32, #tpu.memory_space<vmem>>, vector<8x4xf32>,
    return
  }
  func.func @transform_0(%arg0: i32) -> (i32, i32) {
    %c0_i32 = arith.constant 0 : i32
    %c0_i32_0 = arith.constant 0 : i32
    return %arg0, %c0_i32 : i32, i32
  }
  func.func @transform_1(%arg0: i32) -> (i32, i32) {
    %c0_i32 = arith.constant 0 : i32
    %c0_i32_0 = arith.constant 0 : i32
    %c0_i32_1 = arith.constant 0 : i32
    return %c0_i32, %c0_i32_0 : i32, i32
  }
  func.func @transform_2(%arg0: i32) -> (i32, i32) {
    %c0_i32 = arith.constant 0 : i32
    %c0_i32_0 = arith.constant 0 : i32
    %c0_i32_1 = arith.constant 0 : i32
    return %c0_i32, %c0_i32_0 : i32, i32
  }
  func.func @transform_3(%arg0: i32) -> (i32, i32) {
    %c0_i32 = arith.constant 0 : i32
    %c0_i32_0 = arith.constant 0 : i32
    %c0_i32_1 = arith.constant 0 : i32
    return %c0_i32, %c0_i32_0 : i32, i32
  }
  func.func @transform_4(%arg0: i32) -> (i32, i32) {
    %c0_i32 = arith.constant 0 : i32
    %c0_i32_0 = arith.constant 0 : i32
    %c0_i32_1 = arith.constant 0 : i32
    return %c0_i32, %c0_i32_0 : i32, i32
  }
  func.func @transform_5(%arg0: i32) -> (i32, i32) {
    %c0_i32 = arith.constant 0 : i32
    %c0_i32_0 = arith.constant 0 : i32
    %c0_i32_1 = arith.constant 0 : i32
    return %c0_i32, %c0_i32_0 : i32, i32
  }
  func.func @transform_6(%arg0: i32) -> (i32, i32) {
    %c0_i32 = arith.constant 0 : i32
    %c0_i32_0 = arith.constant 0 : i32
    %c0_i32_1 = arith.constant 0 : i32
    return %c0_i32, %c0_i32_0 : i32, i32
  }
  func.func @transform_7(%arg0: i32) -> (i32, i32) {
    %c0_i32 = arith.constant 0 : i32
    %c0_i32_0 = arith.constant 0 : i32
    return %arg0, %c0_i32 : i32, i32
  }
}

</mosaic_0001>

<bundles_post_ra>
// kernel: tpu_custom_call.1
= control target key start
LH: loop header
LB: loop body
LE: loop exit
PB: predicated region body
PF: predicated region fallthrough
CT: control target
= control target key end

     0   :  { %12 = vsyncpa [#allocation3], 0  ;;  %s700_s0 = inlined_call_operand.vmem [shape: f32[8,16], index: 0, kind: input, shape index: {}]   ;;  %s701_s1 = inlined_call_operand.hbm [shape: f32[16,128], index: 1, kind: input, shape index: {}]   ;;  %s702_s2 = inlined_call_operand.vmem [shape: f32[1,128], index: 2, kind: input, shape index: {}]   ;;  %s703_s3 = inlined_call_operand.vmem [shape: f32[128,128], index: 3, kind: input, shape index: {}]   ;;  %s704_s4 = inlined_call_operand.hbm [shape: f32[1,128], index: 4, kind: input, shape index: {}]   ;;  %s705_s5 = inlined_call_operand.vmem [shape: f32[128,4], index: 5, kind: input, shape index: {}]   ;;  %s706_s6 = inlined_call_operand.vmem [shape: f32[1,4], index: 6, kind: input, shape index: {}]   ;;  %s707_s7 = inlined_call_operand.vmem [shape: f32[8,4], index: 7, kind: output, shape index: {}]  }
   0x1   :  { %13 = vsyncpa [#allocation5], 0  ;;  %s500_s24 = smov [#allocation2]  }
   0x2   :  { %s21_s25 = sshll.u32 %s500_s24, 4  ;;  %s22_s25 = int_to_ptr.vmem [resolvable:$true] %s21_s25 }
   0x3   :  { %s464_s26 = scalar_lea.vmem %s22_s25, 256  ;;  %p469_p1 = scmp.lt.s32.totalorder %s22_s25, %s22_s25 }
   0x4   :  { %p465_p0 = scmp.ne.s32.totalorder %s22_s25, %s464_s26  ;;  %p470_p2 = scmp.lt.s32.totalorder %s464_s26, %s464_s26 }
   0x6   :  { %p471_p3 = por %p470_p2, %p469_p1 }
   0x8   :  { %p472_p4 = pnand %p471_p3, %p465_p0 }
   0xa   :  { %475 = shalt.err (!%p472_p4)
}
   0xb   :  { %s501_s27 = smov 128   ;;  %s502_s28 = smov 8  }
   0xc   :  { %27 = dma.hbm_to_vmem [thread:$0]  %s701_s1, 256, %s22_s25, [#allocation3], %s501_s27, %s501_s27, %s502_s28  }
   0xd   :  { %s503_s8 = smov [#allocation4]  }
   0xe   :  { %s38_s9 = sshll.u32 %s503_s8, 4  ;;  %s39_s9 = int_to_ptr.vmem [resolvable:$true] %s38_s9 }
   0xf   :  { %s484_s10 = scalar_lea.vmem %s39_s9, 16  ;;  %s488_s11 = scalar_lea.vmem %s39_s9, 32 }
  0x10   :  { %p485_p5 = scmp.ne.s32.totalorder %s39_s9, %s484_s10  ;;  %p489_p6 = scmp.lt.s32.totalorder %s39_s9, %s39_s9 }
  0x11   :  { %p490_p7 = scmp.lt.s32.totalorder %s488_s11, %s484_s10 }
  0x13   :  { %p491_p8 = por %p490_p7, %p489_p6 }
  0x15   :  { %p492_p9 = pnand %p491_p8, %p485_p5 }
  0x17   :  { %495 = shalt.err (!%p492_p9)
}
  0x18   :  { %41 = dma.hbm_to_vmem [thread:$0]  %s704_s4, 16, %s39_s9, [#allocation5]  }
  0x19   :  { %496 = dma.done.wait [#allocation3], 256  }
  0x1a   :  { %497 = vsyncadd [#allocation3], 4294967040 }
  0x1b   :  { %498 = dma.done.wait [#allocation5], 16  }
  0x1c   :  { %499 = vsyncadd [#allocation5], 4294967280  ;;  %v504_v0 = vmov 0.0   ;;  %vm505_vm0 = vmmov 0   ;;  %v54_v1 = vld [vmem:[#allocation2 + $0x8] sm:$0xff]  ;;  %v53_v2 = vld [vmem:[#allocation2] sm:$0xff] }
  0x1d   :  { %373 = vmatprep.subr.mxu0 %v504_v0  ;;  %377 = vmatprep.mubr.msk.f32.mxu0 %vm505_vm0, %v504_v0  ;;  %v52_v3 = vld [vmem:[%s700_s0] sm:$0xff]  ;;  %vm62_vm1 = vcmask 130048   ;;  %v152_v4 = vld [vmem:[%s703_s3 + $0x78] sm:$0xff]  ;;  %v151_v5 = vld [vmem:[%s703_s3 + $0x70] sm:$0xff]  ;;  %vm324_vm2 = vcmask 31744  }
  0x1e   :  { %380 = vmatprep.subr.mxu1 %v504_v0  ;;  %412 = vmatprep.mubr.msk.f32.mxu1 %vm505_vm0, %v504_v0  ;;  %v150_v6 = vld [vmem:[%s703_s3 + $0x68] sm:$0xff]  ;;  %v149_v7 = vld [vmem:[%s703_s3 + $0x60] sm:$0xff]  ;;  %v148_v8 = vld [vmem:[%s703_s3 + $0x58] sm:$0xff] }
  0x1f   :  { %374 = vmatpush3.msra.mxu0 %v54_v1  ;;  %381 = vmatpush3.msra.mxu1 %v152_v4  ;;  %v147_v9 = vld [vmem:[%s703_s3 + $0x50] sm:$0xff]  ;;  %v146_v10 = vld [vmem:[%s703_s3 + $0x48] sm:$0xff]  ;;  %v145_v11 = vld [vmem:[%s703_s3 + $0x40] sm:$0xff] }
  0x20   :  { %375 = vmatprep.subr.mxu0 %v504_v0  ;;  %382 = vmatprep.subr.mxu1 %v504_v0  ;;  %v144_v12 = vld [vmem:[%s703_s3 + $0x38] sm:$0xff]  ;;  %v143_v13 = vld [vmem:[%s703_s3 + $0x30] sm:$0xff]  ;;  %v142_v14 = vld [vmem:[%s703_s3 + $0x28] sm:$0xff] }
  0x21   :  { %376 = vmatpush3.msra.mxu0 %v53_v2  ;;  %383 = vmatpush3.msra.mxu1 %v151_v5  ;;  %v141_v15 = vld [vmem:[%s703_s3 + $0x20] sm:$0xff]  ;;  %v140_v16 = vld [vmem:[%s703_s3 + $0x18] sm:$0xff]  ;;  %v139_v17 = vld [vmem:[%s703_s3 + $0x10] sm:$0xff] }
  0x22   :  { %378 = vmatmul.mubr.msk.f32.vlgmr.msra.gmra.mxu0 %vm62_vm1, %v52_v3  ;;  %384 = vmatprep.subr.mxu1 %v504_v0  ;;  %v138_v18 = vld [vmem:[%s703_s3 + $0x8] sm:$0xff]  ;;  %v137_v19 = vld [vmem:[%s703_s3] sm:$0xff]  ;;  %v246_v20 = vld [vmem:[%s705_s5 + $0x78] sm:$0xff] }
  0x23   :  { %415 = vmatprep.subr.mxu0 %v504_v0  ;;  %385 = vmatpush3.msra.mxu1 %v150_v6  ;;  %v245_v21 = vld [vmem:[%s705_s5 + $0x70] sm:$0xff]  ;;  %v244_v22 = vld [vmem:[%s705_s5 + $0x68] sm:$0xff]  ;;  %v243_v23 = vld [vmem:[%s705_s5 + $0x60] sm:$0xff] }
  0x24   :  { %447 = vmatprep.mubr.msk.f32.mxu0 %vm505_vm0, %v504_v0  ;;  %386 = vmatprep.subr.mxu1 %v504_v0  ;;  %v242_v24 = vld [vmem:[%s705_s5 + $0x58] sm:$0xff]  ;;  %v241_v25 = vld [vmem:[%s705_s5 + $0x50] sm:$0xff]  ;;  %v240_v26 = vld [vmem:[%s705_s5 + $0x48] sm:$0xff] }
  0x25   :  { %387 = vmatpush3.msra.mxu1 %v149_v7  ;;  %416 = vmatpush3.msra.mxu0 %v246_v20  ;;  %v239_v27 = vld [vmem:[%s705_s5 + $0x40] sm:$0xff]  ;;  %v238_v28 = vld [vmem:[%s705_s5 + $0x38] sm:$0xff]  ;;  %v237_v29 = vld [vmem:[%s705_s5 + $0x30] sm:$0xff] }
  0x26   :  { %388 = vmatprep.subr.mxu1 %v504_v0  ;;  %417 = vmatprep.subr.mxu0 %v504_v0  ;;  %v236_v30 = vld [vmem:[%s705_s5 + $0x28] sm:$0xff]  ;;  %v235_v31 = vld [vmem:[%s705_s5 + $0x20] sm:$0xff]  ;;  %v234_v32 = vld [vmem:[%s705_s5 + $0x18] sm:$0xff] }
  0x27   :  { %389 = vmatpush3.msra.mxu1 %v148_v8  ;;  %418 = vmatpush3.msra.mxu0 %v245_v21  ;;  %v332_v33 = vld [vmem:[%s702_s2] ss:$0 sm:$0xff]  ;;  %v233_v38 = vld [vmem:[%s705_s5 + $0x10] sm:$0xff]  ;;  %v232_v39 = vld [vmem:[%s705_s5 + $0x8] sm:$0xff] }
  0x28   :  { %390 = vmatprep.subr.mxu1 %v504_v0  ;;  %419 = vmatprep.subr.mxu0 %v504_v0  ;;  %v231_v40 = vld [vmem:[%s705_s5] sm:$0xff]  ;;  %v334_v41 = vld [vmem:[#allocation4] ss:$0 sm:$0xff] }
  0x29   :  { %391 = vmatpush3.msra.mxu1 %v147_v9  ;;  %420 = vmatpush3.msra.mxu0 %v244_v22  ;;  %v335_v46 = vld [vmem:[%s706_s6] ss:$0 sm:$0xff] }
  0x2a   :  { %392 = vmatprep.subr.mxu1 %v504_v0  ;;  %421 = vmatprep.subr.mxu0 %v504_v0 }
  0x2b   :  { %393 = vmatpush3.msra.mxu1 %v146_v10  ;;  %422 = vmatpush3.msra.mxu0 %v243_v23 }
  0x2c   :  { %394 = vmatprep.subr.mxu1 %v504_v0  ;;  %423 = vmatprep.subr.mxu0 %v504_v0 }
  0x2d   :  { %395 = vmatpush3.msra.mxu1 %v145_v11  ;;  %424 = vmatpush3.msra.mxu0 %v242_v24 }
  0x2e   :  { %396 = vmatprep.subr.mxu1 %v504_v0  ;;  %425 = vmatprep.subr.mxu0 %v504_v0 }
  0x2f   :  { %397 = vmatpush3.msra.mxu1 %v144_v12  ;;  %426 = vmatpush3.msra.mxu0 %v241_v25 }
  0x30   :  { %398 = vmatprep.subr.mxu1 %v504_v0  ;;  %427 = vmatprep.subr.mxu0 %v504_v0 }
  0x31   :  { %399 = vmatpush3.msra.mxu1 %v143_v13  ;;  %428 = vmatpush3.msra.mxu0 %v240_v26 }
  0x32   :  { %400 = vmatprep.subr.mxu1 %v504_v0  ;;  %429 = vmatprep.subr.mxu0 %v504_v0 }
  0x33   :  { %401 = vmatpush3.msra.mxu1 %v142_v14  ;;  %430 = vmatpush3.msra.mxu0 %v239_v27 }
  0x34   :  { %402 = vmatprep.subr.mxu1 %v504_v0  ;;  %431 = vmatprep.subr.mxu0 %v504_v0 }
  0x35   :  { %403 = vmatpush3.msra.mxu1 %v141_v15  ;;  %432 = vmatpush3.msra.mxu0 %v238_v28 }
  0x36   :  { %404 = vmatprep.subr.mxu1 %v504_v0  ;;  %433 = vmatprep.subr.mxu0 %v504_v0 }
  0x37   :  { %405 = vmatpush3.msra.mxu1 %v140_v16  ;;  %434 = vmatpush3.msra.mxu0 %v237_v29 }
  0x38   :  { %406 = vmatprep.subr.mxu1 %v504_v0  ;;  %435 = vmatprep.subr.mxu0 %v504_v0 }
  0x39   :  { %407 = vmatpush3.msra.mxu1 %v139_v17  ;;  %436 = vmatpush3.msra.mxu0 %v236_v30 }
  0x3a   :  { %408 = vmatprep.subr.mxu1 %v504_v0  ;;  %437 = vmatprep.subr.mxu0 %v504_v0 }
  0x3b   :  { %409 = vmatpush3.msra.mxu1 %v138_v18  ;;  %438 = vmatpush3.msra.mxu0 %v235_v31 }
  0x3c   :  { %410 = vmatprep.subr.mxu1 %v504_v0  ;;  %439 = vmatprep.subr.mxu0 %v504_v0 }
  0x3d   :  { %411 = vmatpush3.msra.mxu1 %v137_v19  ;;  %440 = vmatpush3.msra.mxu0 %v234_v32 }
  0x3e   :  { %441 = vmatprep.subr.mxu0 %v504_v0 }
  0x3f   :  { %442 = vmatpush3.msra.mxu0 %v233_v38 }
  0x40   :  { %443 = vmatprep.subr.mxu0 %v504_v0 }
  0x41   :  { %444 = vmatpush3.msra.mxu0 %v232_v39 }
  0x42   :  { %445 = vmatprep.subr.mxu0 %v504_v0 }
  0x43   :  { %446 = vmatpush3.msra.mxu0 %v231_v40 }
  0xe2   :  { %v132_v34 = vpop.f32.mrf.mxu0 }
  0xe3   :  { %v133_v35 = vadd.f32 %v332_v33, %v132_v34 }
  0xe4   :  { %v379_v36 = vpop.f32.mrf.mxu0 }
  0xe5   :  { %v136_v37 = vmax.f32 %v133_v35, 0.0 }
  0xe7   :  { %413 = vmatmul.mubr.f32.vlgmr.msra.gmra.mxu1 %v136_v37 }
 0x1a7   :  { %v226_v42 = vpop.f32.mrf.mxu1 }
 0x1a8   :  { %v227_v43 = vadd.f32 %v334_v41, %v226_v42 }
 0x1a9   :  { %v414_v44 = vpop.f32.mrf.mxu1 }
 0x1aa   :  { %v230_v45 = vmax.f32 %v227_v43, 0.0 }
 0x1ac   :  { %448 = vmatmul.mubr.f32.vlgmr.msra.gmra.mxu0 %v230_v45 }
 0x26c   :  { %v320_v47 = vpop.f32.mrf.mxu0 }
 0x26d   :  { %v321_v48 = vadd.f32 %v335_v46, %v320_v47 }
 0x26e   :  { %v449_v49 = vpop.f32.mrf.mxu0 }
 0x26f   :  { %325 = vst.msk [vmem:[%s707_s7] sm:$0xff] %vm324_vm2, %v321_v48 }
 0x270   :  { %330 = vsyncpa [#allocation3], 1 }
 0x271   :  { %331 = vsyncpa [#allocation5], 1 }

</bundles_post_ra>
